<compile_context>
chip_gen: v6e
topology: v6e:2x2x1
jax: 0.10.0
libtpu: 0.0.40
codegen_flags: <defaults>
</compile_context>

<pallas_src>
import functools

import jax
import jax.numpy as jnp
from jax.experimental import pallas as pl
from jax.experimental.pallas import tpu as pltpu

_BN_EPS = 1e-5
_LANE = 128      # pad all feature/hidden/output dims to a multiple of this
_SUBLANE = 8     # f32 sublane tile
_MAX_TB = 512    # batch tile cap (>=512 rows reaches ~85% of HBM roofline)


def _round_up(n, m):
    return ((n + m - 1) // m) * m


# ----------------------------------------------------------------------------
# Fully-fused Pallas kernel:
#   h0 = x
#   h_{l+1} = relu(h_l @ W_l + b_l)            for every shared layer
#   out     = relu(h_last @ W_heads + b_heads)  (policy || value, concatenated)
# Weights are bf16 (MXU-native); activations / bias / relu stay f32; the
# matmul accumulates in f32.
# ----------------------------------------------------------------------------
def _make_fused_mlp_kernel(num_layers):
    """num_layers = number of (W, b) pairs, shared layers + 1 fused head."""

    def kernel(*refs):
        x_ref = refs[0]
        out_ref = refs[-1]
        wb_refs = refs[1:-1]  # alternating W, b refs

        h = x_ref[...]                              # f32 activations
        for l in range(num_layers):
            w = wb_refs[2 * l][...]                 # bf16 weights
            b = wb_refs[2 * l + 1][...]             # f32 bias row
            z = jnp.dot(h.astype(jnp.bfloat16), w,
                        preferred_element_type=jnp.float32) + b
            h = jnp.maximum(z, 0.0)
        out_ref[...] = h

    return kernel


def fused_mlp_extractor(x, layers):
    """x: (B, feature_dim) f32.
    layers: list of (W, b) with W (d_in_pad, d_out_pad) bf16 and
    b (1, d_out_pad) f32, all lane-padded to multiples of 128; the last entry
    is the concatenated policy||value head. Returns a (B_pad, d_out_pad) f32
    slab (caller slices the valid rows/columns out)."""
    B, D = x.shape
    d_in_pad = layers[0][0].shape[0]
    d_out_pad = layers[-1][0].shape[1]

    # Sublane-aligned batch tile, capped for VMEM; pad B up to a multiple.
    tb = min(_MAX_TB, _round_up(B, _SUBLANE))
    b_pad = _round_up(B, tb)
    x_pad = jnp.pad(x, ((0, b_pad - B), (0, d_in_pad - D)))
    grid = (b_pad // tb,)

    flat_args = []
    in_specs = [pl.BlockSpec((tb, d_in_pad), lambda i: (i, 0))]
    for w, b in layers:
        flat_args.append(w)
        flat_args.append(b)
        # Constant index maps -> weights/biases stay VMEM-resident across
        # all grid steps (no re-DMA).
        in_specs.append(pl.BlockSpec(w.shape, lambda i: (0, 0)))
        in_specs.append(pl.BlockSpec(b.shape, lambda i: (0, 0)))

    # Cost estimate + explicit VMEM budget (fits v7x's 64 MiB ceiling).
    flops = 2 * b_pad * sum(w.shape[0] * w.shape[1] for w, _ in layers)
    w_bytes = sum(int(w.size) * w.dtype.itemsize +
                  int(b.size) * b.dtype.itemsize for w, b in layers)
    io_bytes = int(x_pad.size) * 4 + b_pad * d_out_pad * 4
    act_bytes = 2 * tb * (d_in_pad + d_out_pad) * 4  # double-buffered in/out
    vmem_budget = min(64 << 20, 4 * (w_bytes + act_bytes) + (8 << 20))

    return pl.pallas_call(
        _make_fused_mlp_kernel(len(layers)),
        out_shape=jax.ShapeDtypeStruct((b_pad, d_out_pad), jnp.float32),
        grid=grid,
        in_specs=in_specs,
        out_specs=pl.BlockSpec((tb, d_out_pad), lambda i: (i, 0)),
        compiler_params=pltpu.CompilerParams(
            dimension_semantics=("parallel",),
            vmem_limit_bytes=vmem_budget),
        cost_estimate=pl.CostEstimate(
            flops=flops, transcendentals=0,
            bytes_accessed=w_bytes + io_bytes),
    )(x_pad, *flat_args)


# ----------------------------------------------------------------------------
# Parameter construction (deterministic, PyTorch-default-style init)
# ----------------------------------------------------------------------------
def _init_block(key, d_in, d_out):
    """One (Linear + BatchNorm1d) block's raw parameters."""
    k_w, k_b, k_g, k_be, k_m, k_v = jax.random.split(key, 6)
    bound = 1.0 / jnp.sqrt(jnp.float32(d_in))
    w = jax.random.uniform(k_w, (d_in, d_out), jnp.float32, -bound, bound)
    b = jax.random.uniform(k_b, (d_out,), jnp.float32, -bound, bound)
    # Non-trivial BN params / running stats so the BN math is exercised.
    gamma = 1.0 + 0.1 * jax.random.normal(k_g, (d_out,), jnp.float32)
    beta = 0.1 * jax.random.normal(k_be, (d_out,), jnp.float32)
    running_mean = 0.1 * jax.random.normal(k_m, (d_out,), jnp.float32)
    running_var = 1.0 + 0.1 * jnp.abs(
        jax.random.normal(k_v, (d_out,), jnp.float32))
    return dict(w=w, b=b, gamma=gamma, beta=beta,
                mean=running_mean, var=running_var)


def init_params(key, feature_dim, net_arch):
    keys = jax.random.split(key, len(net_arch) + 2)
    shared = []
    last = feature_dim
    for i, layer_size in enumerate(net_arch):
        shared.append(_init_block(keys[i], last, layer_size))
        last = layer_size
    policy = _init_block(keys[len(net_arch)], last, last)
    value = _init_block(keys[len(net_arch) + 1], last, last)
    return dict(shared=shared, policy=policy, value=value)


# ----------------------------------------------------------------------------
# One-time parameter prep: fold BN(eval) into Linear, concat the two heads,
# lane-pad every dim to a multiple of 128, cast weights to bf16.
# Zero-padded weight columns + zero-padded biases keep all padding columns of
# the activations exactly zero through ReLU, so numerics are unchanged.
# ----------------------------------------------------------------------------
def _fold_block(p, eps=_BN_EPS):
    scale = p["gamma"] / jnp.sqrt(p["var"] + eps)
    w = p["w"] * scale[None, :]
    b = p["b"] * scale + (p["beta"] - p["mean"] * scale)
    return w, b


def _pad2d(arr, rows, cols):
    return jnp.pad(arr, ((0, rows - arr.shape[0]), (0, cols - arr.shape[1])))


def _pad_layer(w, b):
    d_in_pad = _round_up(w.shape[0], _LANE)
    d_out_pad = _round_up(w.shape[1], _LANE)
    w_p = _pad2d(w, d_in_pad, d_out_pad).astype(jnp.bfloat16)
    b_p = _pad2d(b.reshape(1, -1), 1, d_out_pad).astype(jnp.float32)
    return w_p, b_p


def prepare_params(params):
    """Returns ([(W, b), ...] padded/bf16 layers incl. concatenated head,
    latent_dim)."""
    layers = [_pad_layer(*_fold_block(p)) for p in params["shared"]]
    w_pi, b_pi = _fold_block(params["policy"])
    w_vf, b_vf = _fold_block(params["value"])
    w_head = jnp.concatenate([w_pi, w_vf], axis=1)
    b_head = jnp.concatenate([b_pi, b_vf], axis=0)
    layers.append(_pad_layer(w_head, b_head))
    latent_dim = params["policy"]["w"].shape[1]
    return layers, latent_dim


# ----------------------------------------------------------------------------
# Forward pass: single fused kernel call; slice the valid pi/vf columns out of
# the lane-dense output slab in the wrapper.
# ----------------------------------------------------------------------------
@functools.partial(jax.jit, static_argnums=(2,))
def custom_mlp_extractor_forward(prepared_layers, features, latent_dim):
    out = fused_mlp_extractor(features.astype(jnp.float32), prepared_layers)
    B = features.shape[0]
    latent_pi = out[:B, :latent_dim]
    latent_vf = out[:B, latent_dim:2 * latent_dim]
    return latent_pi, latent_vf


# ----------------------------------------------------------------------------
# Pure-JAX reference (unfolded BN math, f32) for correctness checking.
# ----------------------------------------------------------------------------
def _ref_block(x, p, eps=_BN_EPS):
    z = x @ p["w"] + p["b"]
    z = (z - p["mean"]) / jnp.sqrt(p["var"] + eps) * p["gamma"] + p["beta"]
    return jnp.maximum(z, 0.0)


def _ref_forward(params, features):
    shared = features
    for p in params["shared"]:
        shared = _ref_block(shared, p)
    return _ref_block(shared, params["policy"]), _ref_block(shared,
                                                            params["value"])


if __name__ == "__main__":
    key = jax.random.PRNGKey(0)
    k_params, k_x = jax.random.split(key)

    batch = 8
    feature_dim = 32
    net_arch = [32, 32]

    params = init_params(k_params, feature_dim, net_arch)
    features = jax.random.normal(k_x, (batch, feature_dim), jnp.float32)

    # One-time prep (BN fold + head concat + lane padding + bf16 cast),
    # outside the hot path.
    prepared, latent = prepare_params(params)

    latent_pi, latent_vf = custom_mlp_extractor_forward(prepared, features,
                                                        latent)
    latent_pi = jax.block_until_ready(latent_pi)
    latent_vf = jax.block_until_ready(latent_vf)

    ref_pi, ref_vf = _ref_forward(params, features)
    assert latent_pi.shape == (batch, net_arch[-1])
    assert latent_vf.shape == (batch, net_arch[-1])
    # bf16 weights/matmul operands -> relaxed tolerance vs the f32 reference.
    assert jnp.allclose(latent_pi, ref_pi, atol=5e-2, rtol=5e-2)
    assert jnp.allclose(latent_vf, ref_vf, atol=5e-2, rtol=5e-2)

    print("KERNEL_OK")
</pallas_src>

<mosaic_0001>
module attributes {stable_mosaic.version = 11 : i64} {
  func.func @kernel(%arg0: i32, %arg1: memref<8x128xf32, #tpu.memory_space<vmem>>, %arg2: memref<128x128xbf16, #tpu.memory_space<vmem>>, %arg3: memref<1x128xf32, #tpu.memory_space<vmem>>, %arg4: memref<128x128xbf16, #tpu.memory_space<vmem>>, %arg5: memref<1x128xf32, #tpu.memory_space<vmem>>, %arg6: memref<128x128xbf16, #tpu.memory_space<vmem>>, %arg7: memref<1x128xf32, #tpu.memory_space<vmem>>, %arg8: memref<8x128xf32, #tpu.memory_space<vmem>>) attributes {dimension_semantics = [#tpu.dimension_semantics<parallel>], iteration_bounds = array<i64: 1>, scalar_prefetch = 0 : i64, scratch_operands = 0 : i64, tpu.core_type = #tpu.core_type<tc>, window_params = [{transform_indices = @transform_0, window_bounds = array<i64: 8, 128>}, {pipeline_mode = #tpu.pipeline_mode<synchronous>, transform_indices = @transform_1, window_bounds = array<i64: 128, 128>}, {pipeline_mode = #tpu.pipeline_mode<synchronous>, transform_indices = @transform_2, window_bounds = array<i64: 1, 128>}, {pipeline_mode = #tpu.pipeline_mode<synchronous>, transform_indices = @transform_3, window_bounds = array<i64: 128, 128>}, {pipeline_mode = #tpu.pipeline_mode<synchronous>, transform_indices = @transform_4, window_bounds = array<i64: 1, 128>}, {pipeline_mode = #tpu.pipeline_mode<synchronous>, transform_indices = @transform_5, window_bounds = array<i64: 128, 128>}, {pipeline_mode = #tpu.pipeline_mode<synchronous>, transform_indices = @transform_6, window_bounds = array<i64: 1, 128>}, {transform_indices = @transform_7, window_bounds = array<i64: 8, 128>}]} {
    %c0 = arith.constant 0 : index
    %c0_0 = arith.constant 0 : index
    %0 = vector.load %arg1[%c0, %c0_0] : memref<8x128xf32, #tpu.memory_space<vmem>>, vector<8x128xf32>
    %c0_1 = arith.constant 0 : index
    %c0_2 = arith.constant 0 : index
    %1 = vector.load %arg2[%c0_1, %c0_2] : memref<128x128xbf16, #tpu.memory_space<vmem>>, vector<128x128xbf16>
    %c0_3 = arith.constant 0 : index
    %c0_4 = arith.constant 0 : index
    %2 = vector.load %arg3[%c0_3, %c0_4] : memref<1x128xf32, #tpu.memory_space<vmem>>, vector<1x128xf32>
    %3 = arith.truncf %0 : vector<8x128xf32> to vector<8x128xbf16>
    %cst = arith.constant dense<0.000000e+00> : vector<8x128xf32>
    %4 = tpu.matmul %3, %1, %cst {dimension_numbers = #tpu.dot_dimension_numbers<[1], [0], [0], [1], [0, 0, 1, 1], [], []>} : vector<8x128xbf16>, vector<128x128xbf16>, vector<8x128xf32> -> vector<8x128xf32>
    %5 = vector.broadcast %2 : vector<1x128xf32> to vector<8x128xf32>
    %6 = arith.addf %4, %5 : vector<8x128xf32>
    %cst_5 = arith.constant 0.000000e+00 : f32
    %7 = vector.broadcast %cst_5 : f32 to vector<8x128xf32>
    %8 = arith.maximumf %6, %7 : vector<8x128xf32>
    %c0_6 = arith.constant 0 : index
    %c0_7 = arith.constant 0 : index
    %9 = vector.load %arg4[%c0_6, %c0_7] : memref<128x128xbf16, #tpu.memory_space<vmem>>, vector<128x128xbf16>
    %c0_8 = arith.constant 0 : index
    %c0_9 = arith.constant 0 : index
    %10 = vector.load %arg5[%c0_8, %c0_9] : memref<1x128xf32, #tpu.memory_space<vmem>>, vector<1x128xf32>
    %11 = arith.truncf %8 : vector<8x128xf32> to vector<8x128xbf16>
    %cst_10 = arith.constant dense<0.000000e+00> : vector<8x128xf32>
    %12 = tpu.matmul %11, %9, %cst_10 {dimension_numbers = #tpu.dot_dimension_numbers<[1], [0], [0], [1], [0, 0, 1, 1], [], []>} : vector<8x128xbf16>, vector<128x128xbf16>, vector<8x128xf32> -> vector<8x128xf32>
    %13 = vector.broadcast %10 : vector<1x128xf32> to vector<8x128xf32>
    %14 = arith.addf %12, %13 : vector<8x128xf32>
    %cst_11 = arith.constant 0.000000e+00 : f32
    %15 = vector.broadcast %cst_11 : f32 to vector<8x128xf32>
    %16 = arith.maximumf %14, %15 : vector<8x128xf32>
    %c0_12 = arith.constant 0 : index
    %c0_13 = arith.constant 0 : index
    %17 = vector.load %arg6[%c0_12, %c0_13] : memref<128x128xbf16, #tpu.memory_space<vmem>>, vector<128x128xbf16>
    %c0_14 = arith.constant 0 : index
    %c0_15 = arith.constant 0 : index
    %18 = vector.load %arg7[%c0_14, %c0_15] : memref<1x128xf32, #tpu.memory_space<vmem>>, vector<1x128xf32>
    %19 = arith.truncf %16 : vector<8x128xf32> to vector<8x128xbf16>
    %cst_16 = arith.constant dense<0.000000e+00> : vector<8x128xf32>
    %20 = tpu.matmul %19, %17, %cst_16 {dimension_numbers = #tpu.dot_dimension_numbers<[1], [0], [0], [1], [0, 0, 1, 1], [], []>} : vector<8x128xbf16>, vector<128x128xbf16>, vector<8x128xf32> -> vector<8x128xf32>
    %21 = vector.broadcast %18 : vector<1x128xf32> to vector<8x128xf32>
    %22 = arith.addf %20, %21 : vector<8x128xf32>
    %cst_17 = arith.constant 0.000000e+00 : f32
    %23 = vector.broadcast %cst_17 : f32 to vector<8x128xf32>
    %24 = arith.maximumf %22, %23 : vector<8x128xf32>
    %c0_18 = arith.constant 0 : index
    %c0_19 = arith.constant 0 : index
    %25 = vector.load %arg8[%c0_18, %c0_19] : memref<8x128xf32, #tpu.memory_space<vmem>>, vector<8x128xf32>
    tpu.vector_store %arg8[%c0_18, %c0_19], %24 {strides = array<i32>} : memref<8x128xf32, #tpu.memory_space<vmem>>, vector<8x128xf32>,
    return
  }
  func.func @transform_0(%arg0: i32) -> (i32, i32) {
    %c0_i32 = arith.constant 0 : i32
    %c0_i32_0 = arith.constant 0 : i32
    return %arg0, %c0_i32 : i32, i32
  }
  func.func @transform_1(%arg0: i32) -> (i32, i32) {
    %c0_i32 = arith.constant 0 : i32
    %c0_i32_0 = arith.constant 0 : i32
    %c0_i32_1 = arith.constant 0 : i32
    return %c0_i32, %c0_i32_0 : i32, i32
  }
  func.func @transform_2(%arg0: i32) -> (i32, i32) {
    %c0_i32 = arith.constant 0 : i32
    %c0_i32_0 = arith.constant 0 : i32
    %c0_i32_1 = arith.constant 0 : i32
    return %c0_i32, %c0_i32_0 : i32, i32
  }
  func.func @transform_3(%arg0: i32) -> (i32, i32) {
    %c0_i32 = arith.constant 0 : i32
    %c0_i32_0 = arith.constant 0 : i32
    %c0_i32_1 = arith.constant 0 : i32
    return %c0_i32, %c0_i32_0 : i32, i32
  }
  func.func @transform_4(%arg0: i32) -> (i32, i32) {
    %c0_i32 = arith.constant 0 : i32
    %c0_i32_0 = arith.constant 0 : i32
    %c0_i32_1 = arith.constant 0 : i32
    return %c0_i32, %c0_i32_0 : i32, i32
  }
  func.func @transform_5(%arg0: i32) -> (i32, i32) {
    %c0_i32 = arith.constant 0 : i32
    %c0_i32_0 = arith.constant 0 : i32
    %c0_i32_1 = arith.constant 0 : i32
    return %c0_i32, %c0_i32_0 : i32, i32
  }
  func.func @transform_6(%arg0: i32) -> (i32, i32) {
    %c0_i32 = arith.constant 0 : i32
    %c0_i32_0 = arith.constant 0 : i32
    %c0_i32_1 = arith.constant 0 : i32
    return %c0_i32, %c0_i32_0 : i32, i32
  }
  func.func @transform_7(%arg0: i32) -> (i32, i32) {
    %c0_i32 = arith.constant 0 : i32
    %c0_i32_0 = arith.constant 0 : i32
    return %arg0, %c0_i32 : i32, i32
  }
}

</mosaic_0001>

<bundles_post_ra>
// kernel: custom_mlp_extractor_forward.1
= control target key start
LH: loop header
LB: loop body
LE: loop exit
PB: predicated region body
PF: predicated region fallthrough
CT: control target
= control target key end

     0   :  { %12 = vsyncpa [#allocation3], 0  ;;  %s725_s0 = inlined_call_operand.vmem [shape: f32[8,128], index: 0, kind: input, shape index: {}]   ;;  %s726_s1 = inlined_call_operand.hbm [shape: bf16[128,128], index: 1, kind: input, shape index: {}]   ;;  %s727_s2 = inlined_call_operand.vmem [shape: f32[1,128], index: 2, kind: input, shape index: {}]   ;;  %s728_s3 = inlined_call_operand.hbm [shape: bf16[128,128], index: 3, kind: input, shape index: {}]   ;;  %s729_s4 = inlined_call_operand.vmem [shape: f32[1,128], index: 4, kind: input, shape index: {}]   ;;  %s730_s5 = inlined_call_operand.hbm [shape: bf16[128,128], index: 5, kind: input, shape index: {}]   ;;  %s731_s6 = inlined_call_operand.vmem [shape: f32[1,128], index: 6, kind: input, shape index: {}]   ;;  %s732_s7 = inlined_call_operand.vmem [shape: f32[8,128], index: 7, kind: output, shape index: {}]  }
   0x1   :  { %13 = vsyncpa [#allocation5], 0  ;;  %s624_s24 = smov [#allocation4]   ;;  %s625_s26 = smov [#allocation2]  }
   0x2   :  { %s35_s25 = sshll.u32 %s624_s24, 4  ;;  %s21_s27 = sshll.u32 %s625_s26, 4  ;;  %s36_s25 = int_to_ptr.vmem [resolvable:$true] %s35_s25  ;;  %s22_s27 = int_to_ptr.vmem [resolvable:$true] %s21_s27 }
   0x3   :  { %s568_s28 = scalar_lea.vmem %s36_s25, 1024  ;;  %p573_p1 = scmp.lt.s32.totalorder %s36_s25, %s36_s25 }
   0x4   :  { %p569_p0 = scmp.ne.s32.totalorder %s36_s25, %s568_s28  ;;  %p574_p2 = scmp.lt.s32.totalorder %s568_s28, %s568_s28 }
   0x6   :  { %p575_p3 = por %p574_p2, %p573_p1 }
   0x8   :  { %p576_p4 = pnand %p575_p3, %p569_p0 }
   0xa   :  { %579 = shalt.err (!%p576_p4)
}
   0xb   :  { %s626_s29 = smov 64   ;;  %s627_s30 = smov 4  }
   0xc   :  { %41 = dma.hbm_to_vmem [thread:$0]  %s728_s3, 1024, %s36_s25, [#allocation5], %s626_s29, %s626_s29, %s627_s30  }
   0xd   :  { %s588_s10 = scalar_lea.vmem %s22_s27, 1024  ;;  %p593_p6 = scmp.lt.s32.totalorder %s22_s27, %s22_s27 }
   0xe   :  { %p589_p5 = scmp.ne.s32.totalorder %s22_s27, %s588_s10  ;;  %p594_p7 = scmp.lt.s32.totalorder %s588_s10, %s588_s10 }
  0x10   :  { %p595_p8 = por %p594_p7, %p593_p6 }
  0x12   :  { %p596_p9 = pnand %p595_p8, %p589_p5 }
  0x14   :  { %599 = shalt.err (!%p596_p9)
}
  0x15   :  { %27 = dma.hbm_to_vmem [thread:$0]  %s726_s1, 1024, %s22_s27, [#allocation3], %s626_s29, %s626_s29, %s627_s30  }
  0x16   :  { %s628_s13 = smov [#allocation6]  }
  0x17   :  { %s49_s14 = sshll.u32 %s628_s13, 4  ;;  %s50_s14 = int_to_ptr.vmem [resolvable:$true] %s49_s14 }
  0x18   :  { %s608_s15 = scalar_lea.vmem %s50_s14, 1024  ;;  %p613_p11 = scmp.lt.s32.totalorder %s50_s14, %s50_s14 }
  0x19   :  { %p609_p10 = scmp.ne.s32.totalorder %s50_s14, %s608_s15  ;;  %p614_p12 = scmp.lt.s32.totalorder %s608_s15, %s608_s15 }
  0x1b   :  { %p615_p13 = por %p614_p12, %p613_p11 }
  0x1d   :  { %p616_p0 = pnand %p615_p13, %p609_p10 }
  0x1f   :  { %619 = shalt.err (!%p616_p0)
}
  0x20   :  { %55 = dma.hbm_to_vmem [thread:$0]  %s730_s5, 1024, %s50_s14, [#allocation5], %s626_s29, %s626_s29, %s627_s30  }
  0x21   :  { %620 = dma.done.wait [#allocation3], 1024  }
  0x22   :  { %621 = vsyncadd [#allocation3], 4294966272 }
  0x23   :  { %622 = dma.done.wait [#allocation5], 2048  }
  0x24   :  { %623 = vsyncadd [#allocation5], 4294965248  ;;  %v629_v0 = vmov 0.0   ;;  %vm630_vm0 = vmmov 0   ;;  %v536_v1 = vld [vmem:[#allocation2 + $0x38] sm:$0xff]   ;;  %v537_v2 = vld [vmem:[#allocation2 + $0x30] sm:$0xff]  }
  0x25   :  { %469 = vmatprep.subr.bf16.mxu0 %v629_v0  ;;  %485 = vmatprep.mubr.msk.bf16.mxu0 %vm630_vm0, %v629_v0  ;;  %v538_v3 = vld [vmem:[#allocation2 + $0x28] sm:$0xff]   ;;  %v544_v4 = vld [vmem:[#allocation4 + $0x38] sm:$0xff]   ;;  %v539_v5 = vld [vmem:[#allocation2 + $0x20] sm:$0xff]  }
  0x26   :  { %489 = vmatprep.subr.bf16.mxu1 %v629_v0  ;;  %505 = vmatprep.mubr.msk.bf16.mxu1 %vm630_vm0, %v629_v0  ;;  %v545_v6 = vld [vmem:[#allocation4 + $0x30] sm:$0xff]   ;;  %v540_v7 = vld [vmem:[#allocation2 + $0x18] sm:$0xff]   ;;  %v546_v8 = vld [vmem:[#allocation4 + $0x28] sm:$0xff]  }
  0x27   :  { %470 = vmatpush3.bf16.msra.mxu0 %v536_v1  ;;  %490 = vmatpush3.bf16.msra.mxu1 %v544_v4  ;;  %v541_v9 = vld [vmem:[#allocation2 + $0x10] sm:$0xff]   ;;  %v547_v10 = vld [vmem:[#allocation4 + $0x20] sm:$0xff]   ;;  %v542_v11 = vld [vmem:[#allocation2 + $0x8] sm:$0xff]  }
  0x28   :  { %471 = vmatprep.subr.bf16.mxu0 %v629_v0  ;;  %491 = vmatprep.subr.bf16.mxu1 %v629_v0  ;;  %v548_v12 = vld [vmem:[#allocation4 + $0x18] sm:$0xff]   ;;  %v543_v13 = vld [vmem:[#allocation2] sm:$0xff]   ;;  %v549_v15 = vld [vmem:[#allocation4 + $0x10] sm:$0xff]  }
  0x29   :  { %v68_v14 = vld [vmem:[%s725_s0] sm:$0xff]  ;;  %v550_v17 = vld [vmem:[#allocation4 + $0x8] sm:$0xff]   ;;  %v552_v19 = vld [vmem:[#allocation6 + $0x38] sm:$0xff]  }
  0x2a   :  { %v86_v16 = vpack.c.bf16 %v68_v14, %v68_v14  ;;  %v551_v18 = vld [vmem:[#allocation4] sm:$0xff]   ;;  %v553_v20 = vld [vmem:[#allocation6 + $0x30] sm:$0xff]   ;;  %v554_v21 = vld [vmem:[#allocation6 + $0x28] sm:$0xff]  }
  0x2b   :  { %472 = vmatpush3.bf16.msra.mxu0 %v537_v2  ;;  %492 = vmatpush3.bf16.msra.mxu1 %v545_v6  ;;  %v555_v22 = vld [vmem:[#allocation6 + $0x20] sm:$0xff]   ;;  %v556_v23 = vld [vmem:[#allocation6 + $0x18] sm:$0xff]   ;;  %v557_v24 = vld [vmem:[#allocation6 + $0x10] sm:$0xff]  }
  0x2c   :  { %473 = vmatprep.subr.bf16.mxu0 %v629_v0  ;;  %493 = vmatprep.subr.bf16.mxu1 %v629_v0  ;;  %v415_v25 = vld [vmem:[%s727_s2] ss:$0 sm:$0xff]  ;;  %v558_v33 = vld [vmem:[#allocation6 + $0x8] sm:$0xff]  }
  0x2d   :  { %v559_v34 = vld [vmem:[#allocation6] sm:$0xff]  }
  0x2e   :  { %v424_v35 = vld [vmem:[%s729_s4] ss:$0 sm:$0xff] }
  0x2f   :  { %474 = vmatpush3.bf16.msra.mxu0 %v538_v3  ;;  %494 = vmatpush3.bf16.msra.mxu1 %v546_v8  ;;  %v433_v43 = vld [vmem:[%s731_s6] ss:$0 sm:$0xff] }
  0x30   :  { %475 = vmatprep.subr.bf16.mxu0 %v629_v0  ;;  %495 = vmatprep.subr.bf16.mxu1 %v629_v0 }
  0x33   :  { %476 = vmatpush3.bf16.msra.mxu0 %v539_v5  ;;  %496 = vmatpush3.bf16.msra.mxu1 %v547_v10 }
  0x34   :  { %477 = vmatprep.subr.bf16.mxu0 %v629_v0  ;;  %497 = vmatprep.subr.bf16.mxu1 %v629_v0 }
  0x37   :  { %478 = vmatpush3.bf16.msra.mxu0 %v540_v7  ;;  %498 = vmatpush3.bf16.msra.mxu1 %v548_v12 }
  0x38   :  { %479 = vmatprep.subr.bf16.mxu0 %v629_v0  ;;  %499 = vmatprep.subr.bf16.mxu1 %v629_v0 }
  0x3b   :  { %480 = vmatpush3.bf16.msra.mxu0 %v541_v9  ;;  %500 = vmatpush3.bf16.msra.mxu1 %v549_v15 }
  0x3c   :  { %481 = vmatprep.subr.bf16.mxu0 %v629_v0  ;;  %501 = vmatprep.subr.bf16.mxu1 %v629_v0 }
  0x3f   :  { %482 = vmatpush3.bf16.msra.mxu0 %v542_v11  ;;  %502 = vmatpush3.bf16.msra.mxu1 %v550_v17 }
  0x40   :  { %483 = vmatprep.subr.bf16.mxu0 %v629_v0  ;;  %503 = vmatprep.subr.bf16.mxu1 %v629_v0 }
  0x43   :  { %484 = vmatpush3.bf16.msra.mxu0 %v543_v13  ;;  %504 = vmatpush3.bf16.msra.mxu1 %v551_v18 }
  0x44   :  { %509 = vmatprep.subr.bf16.mxu0 %v629_v0 }
  0x46   :  { %486 = vmatmul.mubr.bf16.vlgmr.msra.gmra.mxu0 %v86_v16 }
  0x47   :  { %525 = vmatprep.mubr.msk.bf16.mxu0 %vm630_vm0, %v629_v0  ;;  %510 = vmatpush3.bf16.msra.mxu0 %v552_v19 }
  0x48   :  { %511 = vmatprep.subr.bf16.mxu0 %v629_v0 }
  0x4b   :  { %512 = vmatpush3.bf16.msra.mxu0 %v553_v20 }
  0x4c   :  { %513 = vmatprep.subr.bf16.mxu0 %v629_v0 }
  0x4f   :  { %514 = vmatpush3.bf16.msra.mxu0 %v554_v21 }
  0x50   :  { %515 = vmatprep.subr.bf16.mxu0 %v629_v0 }
  0x53   :  { %516 = vmatpush3.bf16.msra.mxu0 %v555_v22 }
  0x54   :  { %517 = vmatprep.subr.bf16.mxu0 %v629_v0 }
  0x57   :  { %518 = vmatpush3.bf16.msra.mxu0 %v556_v23 }
  0x58   :  { %519 = vmatprep.subr.bf16.mxu0 %v629_v0 }
  0x5b   :  { %520 = vmatpush3.bf16.msra.mxu0 %v557_v24 }
  0x5c   :  { %521 = vmatprep.subr.bf16.mxu0 %v629_v0 }
  0x5f   :  { %522 = vmatpush3.bf16.msra.mxu0 %v558_v33 }
  0x60   :  { %523 = vmatprep.subr.bf16.mxu0 %v629_v0 }
  0x63   :  { %524 = vmatpush3.bf16.msra.mxu0 %v559_v34 }
 0x106   :  { %v175_v26 = vpop.f32.mrf.mxu0 }
 0x107   :  { %v176_v27 = vadd.f32 %v415_v25, %v175_v26 }
 0x108   :  { %v487_v28 = vpop.f32.mrf.mxu0 }
 0x109   :  { %v181_v29 = vmax.f32 %v176_v27, 0.0 }
 0x10a   :  { %v178_v30 = vpop.f32.mrf.mxu0 }
 0x10b   :  { %v199_v31 = vpack.c.bf16 %v181_v29, %v181_v29 }
 0x10c   :  { %v488_v32 = vpop.f32.mrf.mxu0 }
 0x10d   :  { %506 = vmatmul.mubr.bf16.vlgmr.msra.gmra.mxu1 %v199_v31 }
 0x1cd   :  { %v288_v36 = vpop.f32.mrf.mxu1 }
 0x1ce   :  { %v289_v37 = vadd.f32 %v424_v35, %v288_v36 }
 0x1cf   :  { %v507_v38 = vpop.f32.mrf.mxu1 }
 0x1d0   :  { %v294_v39 = vmax.f32 %v289_v37, 0.0 }
 0x1d1   :  { %v291_v40 = vpop.f32.mrf.mxu1 }
 0x1d2   :  { %v312_v41 = vpack.c.bf16 %v294_v39, %v294_v39 }
 0x1d3   :  { %v508_v42 = vpop.f32.mrf.mxu1 }
 0x1d4   :  { %526 = vmatmul.mubr.bf16.vlgmr.msra.gmra.mxu0 %v312_v41 }
 0x294   :  { %v401_v44 = vpop.f32.mrf.mxu0 }
 0x295   :  { %v402_v45 = vadd.f32 %v433_v43, %v401_v44 }
 0x296   :  { %v527_v46 = vpop.f32.mrf.mxu0 }
 0x297   :  { %v407_v47 = vmax.f32 %v402_v45, 0.0 }
 0x298   :  { %v404_v48 = vpop.f32.mrf.mxu0 }
 0x299   :  { %408 = vst [vmem:[%s732_s7] sm:$0xff] %v407_v47 }
 0x29a   :  { %v528_v49 = vpop.f32.mrf.mxu0 }
 0x29b   :  { %413 = vsyncpa [#allocation3], 1 }
 0x29c   :  { %414 = vsyncpa [#allocation5], 1 }

</bundles_post_ra>
